<compile_context>
chip_gen: v7x
topology: tpu7x:2x2x1
jax: 0.10.0
libtpu: 0.0.40
codegen_flags: <defaults>
</compile_context>

<pallas_src>
import functools
import math

import jax
import jax.numpy as jnp
from jax.experimental import pallas as pl
from jax.experimental.pallas import tpu as pltpu


# ----------------------------------------------------------------------------
# helpers
# ----------------------------------------------------------------------------
def _layernorm_val(z, g, b, eps):
    """LayerNorm over the last dim of a value already in registers (f32)."""
    mu = jnp.mean(z, axis=-1, keepdims=True)
    var = jnp.mean(jnp.square(z - mu), axis=-1, keepdims=True)
    return (z - mu) * jax.lax.rsqrt(var + eps) * g + b


def _block_rows(M):
    """Pick a row-block size: prefer >=2 sublane-aligned blocks (2 TCs on v7x),
    otherwise fall back to the full (possibly non-multiple-of-8) row count."""
    for bm in (256, 128, 64, 32, 16, 8):
        if M % bm == 0 and M // bm >= 2:
            return bm
    return M


# ----------------------------------------------------------------------------
# Pallas kernels
# ----------------------------------------------------------------------------
def _encoder_layer_kernel(*refs, num_heads, eps, use_bias):
    """One full post-LN transformer encoder layer for one batch element.

    refs (use_bias=True):
      x, bias, wqkv, bqkv, wo, bo, w1, b1, w2, b2, ln1g, ln1b, ln2g, ln2b, out
    """
    if use_bias:
        (x_ref, bias_ref, wqkv_ref, bqkv_ref, wo_ref, bo_ref,
         w1_ref, b1_ref, w2_ref, b2_ref,
         ln1g_ref, ln1b_ref, ln2g_ref, ln2b_ref, o_ref) = refs
    else:
        (x_ref, wqkv_ref, bqkv_ref, wo_ref, bo_ref,
         w1_ref, b1_ref, w2_ref, b2_ref,
         ln1g_ref, ln1b_ref, ln2g_ref, ln2b_ref, o_ref) = refs
        bias_ref = None

    x = x_ref[0].astype(jnp.float32)                 # (S, D)
    D = x.shape[-1]
    Dh = D // num_heads
    scale = 1.0 / math.sqrt(Dh)

    # ---- fused QKV projection: one MXU matmul with N = 3D ------------------
    qkv = jnp.dot(x, wqkv_ref[...],
                  preferred_element_type=jnp.float32) + bqkv_ref[...]   # (S, 3D)

    if use_bias:
        bias = bias_ref[0]                           # (1, S) additive key bias

    # ---- multi-head attention, head split/merge kept in VMEM ----------------
    heads = []
    for h in range(num_heads):                       # static unroll (small H)
        q = qkv[:, h * Dh:(h + 1) * Dh]
        k = qkv[:, D + h * Dh:D + (h + 1) * Dh]
        v = qkv[:, 2 * D + h * Dh:2 * D + (h + 1) * Dh]
        # QK^T without materializing a transpose: contract last dims.
        s = jax.lax.dot_general(q, k, (((1,), (1,)), ((), ())),
                                preferred_element_type=jnp.float32) * scale
        if use_bias:
            s = s + bias
        s = s - jnp.max(s, axis=-1, keepdims=True)
        p = jnp.exp(s)
        p = p * pl.reciprocal(jnp.sum(p, axis=-1, keepdims=True), approx=True)
        heads.append(jnp.dot(p, v, preferred_element_type=jnp.float32))
    attn = jnp.concatenate(heads, axis=-1)           # (S, D)

    # ---- out-projection + residual + LayerNorm (fused epilogue) -------------
    y = jnp.dot(attn, wo_ref[...],
                preferred_element_type=jnp.float32) + bo_ref[...]
    x1 = _layernorm_val(x + y, ln1g_ref[...], ln1b_ref[...], eps)

    # ---- FFN + residual + LayerNorm; (S, dff) intermediate never hits HBM ---
    hdn = jnp.maximum(
        jnp.dot(x1, w1_ref[...], preferred_element_type=jnp.float32) + b1_ref[...],
        0.0)
    y2 = jnp.dot(hdn, w2_ref[...],
                 preferred_element_type=jnp.float32) + b2_ref[...]
    x2 = _layernorm_val(x1 + y2, ln2g_ref[...], ln2b_ref[...], eps)

    o_ref[0] = x2.astype(o_ref.dtype)


def _mlm_head_kernel(x_ref, w1_ref, b1_ref, g_ref, be_ref, w2_ref, b2_ref,
                     o_ref, *, eps):
    """Fused MLM head: linear + LayerNorm + vocab projection (lane-padded)."""
    x = x_ref[...].astype(jnp.float32)
    y = jnp.dot(x, w1_ref[...], preferred_element_type=jnp.float32) + b1_ref[...]
    z = _layernorm_val(y, g_ref[...], be_ref[...], eps)
    o_ref[...] = (jnp.dot(z, w2_ref[...], preferred_element_type=jnp.float32)
                  + b2_ref[...]).astype(o_ref.dtype)


# ----------------------------------------------------------------------------
# kernel wrappers
# ----------------------------------------------------------------------------
def encoder_layer_apply(x, pad_bias, p):
    """x: (B, S, D); pad_bias: (B, 1, S) additive key bias (0 / -1e9) or None.
    Dropout = identity (eval mode). One pallas_call, grid over batch."""
    B, S, D = x.shape
    dff = p["w1"].shape[1]
    use_bias = pad_bias is not None

    kern = functools.partial(_encoder_layer_kernel, num_heads=p["num_heads"],
                             eps=1e-5, use_bias=use_bias)

    row = lambda v: v.reshape(1, -1)

    in_specs = [pl.BlockSpec((1, S, D), lambda b: (b, 0, 0))]
    args = [x]
    if use_bias:
        in_specs.append(pl.BlockSpec((1, 1, S), lambda b: (b, 0, 0)))
        args.append(pad_bias)

    # weights are block-index-constant -> fetched once and kept resident in VMEM
    weights = [
        (p["wqkv"], (D, 3 * D)), (row(p["bqkv"]), (1, 3 * D)),
        (p["wo"], (D, D)), (row(p["bo"]), (1, D)),
        (p["w1"], (D, dff)), (row(p["b1"]), (1, dff)),
        (p["w2"], (dff, D)), (row(p["b2"]), (1, D)),
        (row(p["ln1_g"]), (1, D)), (row(p["ln1_b"]), (1, D)),
        (row(p["ln2_g"]), (1, D)), (row(p["ln2_b"]), (1, D)),
    ]
    for arr, shape in weights:
        in_specs.append(pl.BlockSpec(shape, lambda b: (0, 0)))
        args.append(arr)

    return pl.pallas_call(
        kern,
        out_shape=jax.ShapeDtypeStruct((B, S, D), jnp.float32),
        grid=(B,),
        in_specs=in_specs,
        out_specs=pl.BlockSpec((1, S, D), lambda b: (b, 0, 0)),
        compiler_params=pltpu.CompilerParams(dimension_semantics=("parallel",)),
    )(*args)


def mlm_head_apply(x, w1, b1, g, be, w2_pad, b2_pad):
    """x: (M, D) -> (M, N_pad) logits (lane-dense, slice to vocab in JAX)."""
    M, D = x.shape
    Np = w2_pad.shape[1]
    bm = _block_rows(M)
    return pl.pallas_call(
        functools.partial(_mlm_head_kernel, eps=1e-5),
        out_shape=jax.ShapeDtypeStruct((M, Np), jnp.float32),
        grid=(M // bm,),
        in_specs=[
            pl.BlockSpec((bm, D), lambda i: (i, 0)),
            pl.BlockSpec((D, D), lambda i: (0, 0)),
            pl.BlockSpec((1, D), lambda i: (0, 0)),
            pl.BlockSpec((1, D), lambda i: (0, 0)),
            pl.BlockSpec((1, D), lambda i: (0, 0)),
            pl.BlockSpec((D, Np), lambda i: (0, 0)),
            pl.BlockSpec((1, Np), lambda i: (0, 0)),
        ],
        out_specs=pl.BlockSpec((bm, Np), lambda i: (i, 0)),
        compiler_params=pltpu.CompilerParams(dimension_semantics=("parallel",)),
    )(x, w1, b1.reshape(1, D), g.reshape(1, D), be.reshape(1, D),
      w2_pad, b2_pad.reshape(1, Np))


# ----------------------------------------------------------------------------
# Model params & forward (glue in JAX, compute in the kernels above)
# ----------------------------------------------------------------------------
def sinusoidal_pos_encoding(length, depth):
    pos = jnp.arange(length, dtype=jnp.float32)[:, None]
    i = jnp.arange(depth // 2, dtype=jnp.float32)[None, :]
    angle_rates = 1.0 / jnp.power(10000.0, (2.0 * i) / depth)
    angles = pos * angle_rates
    return jnp.concatenate([jnp.sin(angles), jnp.cos(angles)], axis=-1)


def dense_init(key, fan_in, fan_out):
    w = jax.random.normal(key, (fan_in, fan_out), jnp.float32) * 0.02
    b = jnp.zeros((fan_out,), jnp.float32)
    return w, b


def init_encoder_layer(key, d_model, dff, num_heads):
    ks = jax.random.split(key, 6)
    p = {"num_heads": num_heads}
    wq, bq = dense_init(ks[0], d_model, d_model)
    wk, bk = dense_init(ks[1], d_model, d_model)
    wv, bv = dense_init(ks[2], d_model, d_model)
    # fused QKV weight: one (D, 3D) matmul instead of three (D, D) matmuls
    p["wqkv"] = jnp.concatenate([wq, wk, wv], axis=1)
    p["bqkv"] = jnp.concatenate([bq, bk, bv], axis=0)
    p["wo"], p["bo"] = dense_init(ks[3], d_model, d_model)
    p["w1"], p["b1"] = dense_init(ks[4], d_model, dff)
    p["w2"], p["b2"] = dense_init(ks[5], dff, d_model)
    p["ln1_g"] = jnp.ones((d_model,), jnp.float32)
    p["ln1_b"] = jnp.zeros((d_model,), jnp.float32)
    p["ln2_g"] = jnp.ones((d_model,), jnp.float32)
    p["ln2_b"] = jnp.zeros((d_model,), jnp.float32)
    return p


def init_model(key, char_d, word_d, h_char, l_char, h_word, l_word,
               dff, char_vocab, word_vocab):
    keys = jax.random.split(key, 8)
    params = {
        "char_emb": jax.random.normal(keys[0], (char_vocab, char_d), jnp.float32) * 0.02,
        "word_emb": jax.random.normal(keys[1], (word_vocab, word_d), jnp.float32) * 0.02,
        "char_layers": [init_encoder_layer(k, char_d, dff, h_char)
                        for k in jax.random.split(keys[2], l_char)],
        "word_layers": [init_encoder_layer(k, word_d, dff, h_word)
                        for k in jax.random.split(keys[3], l_word)],
    }
    d_tot = char_d + word_d
    params["head_w1"], params["head_b1"] = dense_init(keys[4], d_tot, d_tot)
    params["head_ln_g"] = jnp.ones((d_tot,), jnp.float32)
    params["head_ln_b"] = jnp.zeros((d_tot,), jnp.float32)
    w2, b2 = dense_init(keys[5], d_tot, word_vocab)
    # lane-dense vocab projection: pad N up to a multiple of 128, slice in JAX.
    n_pad = ((word_vocab + 127) // 128) * 128
    params["head_w2_pad"] = jnp.pad(w2, ((0, 0), (0, n_pad - word_vocab)))
    params["head_b2_pad"] = jnp.pad(b2, (0, n_pad - word_vocab))
    params["word_vocab"] = word_vocab
    return params


def model_sc_forward(params, char_input_ids, word_input_ids, masked_idx,
                     char_d, word_d):
    """masked_idx: int32 flat indices into (B*W) rows — the static-shape stand-in
    for PyTorch's boolean `output[masked_positions]` advanced indexing."""
    B, W = word_input_ids.shape
    NW, C = char_input_ids.shape  # NW == B*W

    # ---- character-level encoder -------------------------------------------
    # TODO(synk): EncoderCharacter internals are not given in the reference; we
    # use embedding + sinusoidal PE + transformer layers + mean pool over chars
    # so the output reshapes to (B, W, character_level_d_model) as the forward
    # requires.  key_mask_padding use inside EncoderCharacter is unknown, so it
    # is not applied here (zero attention bias -> bias path skipped entirely).
    ch = jnp.take(params["char_emb"], char_input_ids, axis=0) * math.sqrt(char_d)
    ch = ch + sinusoidal_pos_encoding(C, char_d)[None, :, :]
    for lp in params["char_layers"]:
        ch = encoder_layer_apply(ch, None, lp)
    char_repr = jnp.mean(ch, axis=1)                 # (B*W, char_d)
    char_repr = char_repr.reshape(B, W, char_d)      # .view(B, W, -1)

    # ---- word-level encoder --------------------------------------------------
    wd = jnp.take(params["word_emb"], word_input_ids, axis=0) * math.sqrt(word_d)
    wd = wd + sinusoidal_pos_encoding(W, word_d)[None, :, :]
    pad = (word_input_ids == 1)                      # True where padding
    pad_bias = jnp.where(pad, -1e9, 0.0).astype(jnp.float32)[:, None, :]  # (B,1,W)
    for lp in params["word_layers"]:
        wd = encoder_layer_apply(wd, pad_bias, lp)

    # ---- concat, select masked positions, fused MLM head --------------------
    out = jnp.concatenate([wd, char_repr], axis=-1)          # (B, W, char_d+word_d)
    out = out.reshape(B * W, char_d + word_d)[masked_idx]    # (K, D_tot)

    logits = mlm_head_apply(out, params["head_w1"], params["head_b1"],
                            params["head_ln_g"], params["head_ln_b"],
                            params["head_w2_pad"], params["head_b2_pad"])
    # nn.Dropout(p=0.1): identity in eval mode.
    return logits[:, :params["word_vocab"]]                  # (K, word_vocab)


# ----------------------------------------------------------------------------
# Driver
# ----------------------------------------------------------------------------
if __name__ == "__main__":
    # Hyperparameters (small, consistent with the module's __init__ signature)
    B, W, C = 2, 8, 8
    CHAR_D, WORD_D = 32, 32
    H_CHAR, L_CHAR = 4, 1
    H_WORD, L_WORD = 4, 2
    DFF = 64
    CHAR_VOCAB, WORD_VOCAB = 40, 50

    key = jax.random.PRNGKey(0)
    k_par, k_ci, k_wi, k_mask = jax.random.split(key, 4)

    params = init_model(k_par, CHAR_D, WORD_D, H_CHAR, L_CHAR, H_WORD, L_WORD,
                        DFF, CHAR_VOCAB, WORD_VOCAB)

    char_input_ids = jax.random.randint(k_ci, (B * W, C), 0, CHAR_VOCAB, jnp.int32)
    word_input_ids = jax.random.randint(k_wi, (B, W), 2, WORD_VOCAB, jnp.int32)
    # mark last two tokens of each sequence as padding (id == 1)
    word_input_ids = word_input_ids.at[:, -2:].set(1)

    # boolean masked_positions (as in the PyTorch forward), converted to static
    # integer indices host-side because JAX needs static output shapes.
    masked_positions = jax.random.uniform(k_mask, (B, W)) < 0.3
    masked_positions = masked_positions.at[0, 0].set(True)
    n_masked = int(masked_positions.sum())
    masked_idx = jnp.nonzero(masked_positions.reshape(-1), size=n_masked)[0]

    out = model_sc_forward(params, char_input_ids, word_input_ids, masked_idx,
                           CHAR_D, WORD_D)
    out = jax.block_until_ready(out)
    assert out.shape == (n_masked, WORD_VOCAB), out.shape
    assert bool(jnp.all(jnp.isfinite(out)))
    print("KERNEL_OK")
</pallas_src>

<mosaic_0001>
module attributes {stable_mosaic.version = 11 : i64} {
  func.func @_encoder_layer_kernel(%arg0: i32, %arg1: memref<1x8x32xf32, #tpu.memory_space<vmem>>, %arg2: memref<32x96xf32, #tpu.memory_space<vmem>>, %arg3: memref<1x96xf32, #tpu.memory_space<vmem>>, %arg4: memref<32x32xf32, #tpu.memory_space<vmem>>, %arg5: memref<1x32xf32, #tpu.memory_space<vmem>>, %arg6: memref<32x64xf32, #tpu.memory_space<vmem>>, %arg7: memref<1x64xf32, #tpu.memory_space<vmem>>, %arg8: memref<64x32xf32, #tpu.memory_space<vmem>>, %arg9: memref<1x32xf32, #tpu.memory_space<vmem>>, %arg10: memref<1x32xf32, #tpu.memory_space<vmem>>, %arg11: memref<1x32xf32, #tpu.memory_space<vmem>>, %arg12: memref<1x32xf32, #tpu.memory_space<vmem>>, %arg13: memref<1x32xf32, #tpu.memory_space<vmem>>, %arg14: memref<1x8x32xf32, #tpu.memory_space<vmem>>) attributes {dimension_semantics = [#tpu.dimension_semantics<parallel>], iteration_bounds = array<i64: 16>, scalar_prefetch = 0 : i64, scratch_operands = 0 : i64, tpu.core_type = #tpu.core_type<tc>, window_params = [{transform_indices = @transform_0, window_bounds = array<i64: 1, 8, 32>}, {pipeline_mode = #tpu.pipeline_mode<synchronous>, transform_indices = @transform_1, window_bounds = array<i64: 32, 96>}, {pipeline_mode = #tpu.pipeline_mode<synchronous>, transform_indices = @transform_2, window_bounds = array<i64: 1, 96>}, {pipeline_mode = #tpu.pipeline_mode<synchronous>, transform_indices = @transform_3, window_bounds = array<i64: 32, 32>}, {pipeline_mode = #tpu.pipeline_mode<synchronous>, transform_indices = @transform_4, window_bounds = array<i64: 1, 32>}, {pipeline_mode = #tpu.pipeline_mode<synchronous>, transform_indices = @transform_5, window_bounds = array<i64: 32, 64>}, {pipeline_mode = #tpu.pipeline_mode<synchronous>, transform_indices = @transform_6, window_bounds = array<i64: 1, 64>}, {pipeline_mode = #tpu.pipeline_mode<synchronous>, transform_indices = @transform_7, window_bounds = array<i64: 64, 32>}, {pipeline_mode = #tpu.pipeline_mode<synchronous>, transform_indices = @transform_8, window_bounds = array<i64: 1, 32>}, {pipeline_mode = #tpu.pipeline_mode<synchronous>, transform_indices = @transform_9, window_bounds = array<i64: 1, 32>}, {pipeline_mode = #tpu.pipeline_mode<synchronous>, transform_indices = @transform_10, window_bounds = array<i64: 1, 32>}, {pipeline_mode = #tpu.pipeline_mode<synchronous>, transform_indices = @transform_11, window_bounds = array<i64: 1, 32>}, {pipeline_mode = #tpu.pipeline_mode<synchronous>, transform_indices = @transform_12, window_bounds = array<i64: 1, 32>}, {transform_indices = @transform_13, window_bounds = array<i64: 1, 8, 32>}]} {
    %c0 = arith.constant 0 : index
    %c0_0 = arith.constant 0 : index
    %c0_1 = arith.constant 0 : index
    %0 = vector.load %arg1[%c0, %c0_0, %c0_1] : memref<1x8x32xf32, #tpu.memory_space<vmem>>, vector<1x8x32xf32>
    %1 = vector.shape_cast %0 : vector<1x8x32xf32> to vector<8x32xf32>
    %c0_2 = arith.constant 0 : index
    %c0_3 = arith.constant 0 : index
    %2 = vector.load %arg2[%c0_2, %c0_3] : memref<32x96xf32, #tpu.memory_space<vmem>>, vector<32x96xf32>
    %cst = arith.constant dense<0.000000e+00> : vector<8x96xf32>
    %3 = tpu.matmul %1, %2, %cst {dimension_numbers = #tpu.dot_dimension_numbers<[1], [0], [0], [1], [0, 0, 1, 1], [], []>} : vector<8x32xf32>, vector<32x96xf32>, vector<8x96xf32> -> vector<8x96xf32>
    %c0_4 = arith.constant 0 : index
    %c0_5 = arith.constant 0 : index
    %4 = vector.load %arg3[%c0_4, %c0_5] : memref<1x96xf32, #tpu.memory_space<vmem>>, vector<1x96xf32>
    %5 = vector.broadcast %4 : vector<1x96xf32> to vector<8x96xf32>
    %6 = arith.addf %3, %5 : vector<8x96xf32>
    %7 = vector.extract_strided_slice %6 {offsets = [0, 0], sizes = [8, 8], strides = [1, 1]} : vector<8x96xf32> to vector<8x8xf32>
    %8 = vector.extract_strided_slice %6 {offsets = [0, 32], sizes = [8, 8], strides = [1, 1]} : vector<8x96xf32> to vector<8x8xf32>
    %9 = vector.extract_strided_slice %6 {offsets = [0, 64], sizes = [8, 8], strides = [1, 1]} : vector<8x96xf32> to vector<8x8xf32>
    %cst_6 = arith.constant dense<0.000000e+00> : vector<8x8xf32>
    %10 = tpu.matmul %7, %8, %cst_6 {dimension_numbers = #tpu.dot_dimension_numbers<[1], [1], [0], [0], [0, 0, 1, 0], [], []>} : vector<8x8xf32>, vector<8x8xf32>, vector<8x8xf32> -> vector<8x8xf32>
    %cst_7 = arith.constant 0.353553385 : f32
    %11 = vector.broadcast %cst_7 : f32 to vector<8x8xf32>
    %12 = arith.mulf %10, %11 : vector<8x8xf32>
    %cst_8 = arith.constant dense<0xFF800000> : vector<8xf32>
    %13 = vector.multi_reduction <maximumf>, %12, %cst_8 [1] : vector<8x8xf32> to vector<8xf32>
    %14 = vector.shape_cast %13 : vector<8xf32> to vector<8x1xf32>
    %15 = vector.broadcast %14 : vector<8x1xf32> to vector<8x8xf32>
    %16 = arith.subf %12, %15 : vector<8x8xf32>
    %17 = math.exp %16 : vector<8x8xf32>
    %cst_9 = arith.constant dense<0.000000e+00> : vector<8xf32>
    %18 = vector.multi_reduction <add>, %17, %cst_9 [1] : vector<8x8xf32> to vector<8xf32>
    %19 = vector.shape_cast %18 : vector<8xf32> to vector<8x1xf32>
    %20 = tpu.reciprocal %19 {approx = true} : vector<8x1xf32> -> vector<8x1xf32>
    %21 = vector.broadcast %20 : vector<8x1xf32> to vector<8x8xf32>
    %22 = arith.mulf %17, %21 : vector<8x8xf32>
    %cst_10 = arith.constant dense<0.000000e+00> : vector<8x8xf32>
    %23 = tpu.matmul %22, %9, %cst_10 {dimension_numbers = #tpu.dot_dimension_numbers<[1], [0], [0], [1], [0, 0, 1, 1], [], []>} : vector<8x8xf32>, vector<8x8xf32>, vector<8x8xf32> -> vector<8x8xf32>
    %24 = vector.extract_strided_slice %6 {offsets = [0, 8], sizes = [8, 8], strides = [1, 1]} : vector<8x96xf32> to vector<8x8xf32>
    %25 = vector.extract_strided_slice %6 {offsets = [0, 40], sizes = [8, 8], strides = [1, 1]} : vector<8x96xf32> to vector<8x8xf32>
    %26 = vector.extract_strided_slice %6 {offsets = [0, 72], sizes = [8, 8], strides = [1, 1]} : vector<8x96xf32> to vector<8x8xf32>
    %cst_11 = arith.constant dense<0.000000e+00> : vector<8x8xf32>
    %27 = tpu.matmul %24, %25, %cst_11 {dimension_numbers = #tpu.dot_dimension_numbers<[1], [1], [0], [0], [0, 0, 1, 0], [], []>} : vector<8x8xf32>, vector<8x8xf32>, vector<8x8xf32> -> vector<8x8xf32>
    %cst_12 = arith.constant 0.353553385 : f32
    %28 = vector.broadcast %cst_12 : f32 to vector<8x8xf32>
    %29 = arith.mulf %27, %28 : vector<8x8xf32>
    %cst_13 = arith.constant dense<0xFF800000> : vector<8xf32>
    %30 = vector.multi_reduction <maximumf>, %29, %cst_13 [1] : vector<8x8xf32> to vector<8xf32>
    %31 = vector.shape_cast %30 : vector<8xf32> to vector<8x1xf32>
    %32 = vector.broadcast %31 : vector<8x1xf32> to vector<8x8xf32>
    %33 = arith.subf %29, %32 : vector<8x8xf32>
    %34 = math.exp %33 : vector<8x8xf32>
    %cst_14 = arith.constant dense<0.000000e+00> : vector<8xf32>
    %35 = vector.multi_reduction <add>, %34, %cst_14 [1] : vector<8x8xf32> to vector<8xf32>
    %36 = vector.shape_cast %35 : vector<8xf32> to vector<8x1xf32>
    %37 = tpu.reciprocal %36 {approx = true} : vector<8x1xf32> -> vector<8x1xf32>
    %38 = vector.broadcast %37 : vector<8x1xf32> to vector<8x8xf32>
    %39 = arith.mulf %34, %38 : vector<8x8xf32>
    %cst_15 = arith.constant dense<0.000000e+00> : vector<8x8xf32>
    %40 = tpu.matmul %39, %26, %cst_15 {dimension_numbers = #tpu.dot_dimension_numbers<[1], [0], [0], [1], [0, 0, 1, 1], [], []>} : vector<8x8xf32>, vector<8x8xf32>, vector<8x8xf32> -> vector<8x8xf32>
    %41 = vector.extract_strided_slice %6 {offsets = [0, 16], sizes = [8, 8], strides = [1, 1]} : vector<8x96xf32> to vector<8x8xf32>
    %42 = vector.extract_strided_slice %6 {offsets = [0, 48], sizes = [8, 8], strides = [1, 1]} : vector<8x96xf32> to vector<8x8xf32>
    %43 = vector.extract_strided_slice %6 {offsets = [0, 80], sizes = [8, 8], strides = [1, 1]} : vector<8x96xf32> to vector<8x8xf32>
    %cst_16 = arith.constant dense<0.000000e+00> : vector<8x8xf32>
    %44 = tpu.matmul %41, %42, %cst_16 {dimension_numbers = #tpu.dot_dimension_numbers<[1], [1], [0], [0], [0, 0, 1, 0], [], []>} : vector<8x8xf32>, vector<8x8xf32>, vector<8x8xf32> -> vector<8x8xf32>
    %cst_17 = arith.constant 0.353553385 : f32
    %45 = vector.broadcast %cst_17 : f32 to vector<8x8xf32>
    %46 = arith.mulf %44, %45 : vector<8x8xf32>
    %cst_18 = arith.constant dense<0xFF800000> : vector<8xf32>
    %47 = vector.multi_reduction <maximumf>, %46, %cst_18 [1] : vector<8x8xf32> to vector<8xf32>
    %48 = vector.shape_cast %47 : vector<8xf32> to vector<8x1xf32>
    %49 = vector.broadcast %48 : vector<8x1xf32> to vector<8x8xf32>
    %50 = arith.subf %46, %49 : vector<8x8xf32>
    %51 = math.exp %50 : vector<8x8xf32>
    %cst_19 = arith.constant dense<0.000000e+00> : vector<8xf32>
    %52 = vector.multi_reduction <add>, %51, %cst_19 [1] : vector<8x8xf32> to vector<8xf32>
    %53 = vector.shape_cast %52 : vector<8xf32> to vector<8x1xf32>
    %54 = tpu.reciprocal %53 {approx = true} : vector<8x1xf32> -> vector<8x1xf32>
    %55 = vector.broadcast %54 : vector<8x1xf32> to vector<8x8xf32>
    %56 = arith.mulf %51, %55 : vector<8x8xf32>
    %cst_20 = arith.constant dense<0.000000e+00> : vector<8x8xf32>
    %57 = tpu.matmul %56, %43, %cst_20 {dimension_numbers = #tpu.dot_dimension_numbers<[1], [0], [0], [1], [0, 0, 1, 1], [], []>} : vector<8x8xf32>, vector<8x8xf32>, vector<8x8xf32> -> vector<8x8xf32>
    %58 = vector.extract_strided_slice %6 {offsets = [0, 24], sizes = [8, 8], strides = [1, 1]} : vector<8x96xf32> to vector<8x8xf32>
    %59 = vector.extract_strided_slice %6 {offsets = [0, 56], sizes = [8, 8], strides = [1, 1]} : vector<8x96xf32> to vector<8x8xf32>
    %60 = vector.extract_strided_slice %6 {offsets = [0, 88], sizes = [8, 8], strides = [1, 1]} : vector<8x96xf32> to vector<8x8xf32>
    %cst_21 = arith.constant dense<0.000000e+00> : vector<8x8xf32>
    %61 = tpu.matmul %58, %59, %cst_21 {dimension_numbers = #tpu.dot_dimension_numbers<[1], [1], [0], [0], [0, 0, 1, 0], [], []>} : vector<8x8xf32>, vector<8x8xf32>, vector<8x8xf32> -> vector<8x8xf32>
    %cst_22 = arith.constant 0.353553385 : f32
    %62 = vector.broadcast %cst_22 : f32 to vector<8x8xf32>
    %63 = arith.mulf %61, %62 : vector<8x8xf32>
    %cst_23 = arith.constant dense<0xFF800000> : vector<8xf32>
    %64 = vector.multi_reduction <maximumf>, %63, %cst_23 [1] : vector<8x8xf32> to vector<8xf32>
    %65 = vector.shape_cast %64 : vector<8xf32> to vector<8x1xf32>
    %66 = vector.broadcast %65 : vector<8x1xf32> to vector<8x8xf32>
    %67 = arith.subf %63, %66 : vector<8x8xf32>
    %68 = math.exp %67 : vector<8x8xf32>
    %cst_24 = arith.constant dense<0.000000e+00> : vector<8xf32>
    %69 = vector.multi_reduction <add>, %68, %cst_24 [1] : vector<8x8xf32> to vector<8xf32>
    %70 = vector.shape_cast %69 : vector<8xf32> to vector<8x1xf32>
    %71 = tpu.reciprocal %70 {approx = true} : vector<8x1xf32> -> vector<8x1xf32>
    %72 = vector.broadcast %71 : vector<8x1xf32> to vector<8x8xf32>
    %73 = arith.mulf %68, %72 : vector<8x8xf32>
    %cst_25 = arith.constant dense<0.000000e+00> : vector<8x8xf32>
    %74 = tpu.matmul %73, %60, %cst_25 {dimension_numbers = #tpu.dot_dimension_numbers<[1], [0], [0], [1], [0, 0, 1, 1], [], []>} : vector<8x8xf32>, vector<8x8xf32>, vector<8x8xf32> -> vector<8x8xf32>
    %75 = tpu.concatenate %23, %40, %57, %74 in 1 : vector<8x8xf32>, vector<8x8xf32>, vector<8x8xf32>, vector<8x8xf32> -> vector<8x32xf32>
    %c0_26 = arith.constant 0 : index
    %c0_27 = arith.constant 0 : index
    %76 = vector.load %arg4[%c0_26, %c0_27] : memref<32x32xf32, #tpu.memory_space<vmem>>, vector<32x32xf32>
    %cst_28 = arith.constant dense<0.000000e+00> : vector<8x32xf32>
    %77 = tpu.matmul %75, %76, %cst_28 {dimension_numbers = #tpu.dot_dimension_numbers<[1], [0], [0], [1], [0, 0, 1, 1], [], []>} : vector<8x32xf32>, vector<32x32xf32>, vector<8x32xf32> -> vector<8x32xf32>
    %c0_29 = arith.constant 0 : index
    %c0_30 = arith.constant 0 : index
    %78 = vector.load %arg5[%c0_29, %c0_30] : memref<1x32xf32, #tpu.memory_space<vmem>>, vector<1x32xf32>
    %79 = vector.broadcast %78 : vector<1x32xf32> to vector<8x32xf32>
    %80 = arith.addf %77, %79 : vector<8x32xf32>
    %81 = arith.addf %1, %80 : vector<8x32xf32>
    %c0_31 = arith.constant 0 : index
    %c0_32 = arith.constant 0 : index
    %82 = vector.load %arg10[%c0_31, %c0_32] : memref<1x32xf32, #tpu.memory_space<vmem>>, vector<1x32xf32>
    %c0_33 = arith.constant 0 : index
    %c0_34 = arith.constant 0 : index
    %83 = vector.load %arg11[%c0_33, %c0_34] : memref<1x32xf32, #tpu.memory_space<vmem>>, vector<1x32xf32>
    %cst_35 = arith.constant dense<0.000000e+00> : vector<8xf32>
    %84 = vector.multi_reduction <add>, %81, %cst_35 [1] : vector<8x32xf32> to vector<8xf32>
    %85 = vector.shape_cast %84 : vector<8xf32> to vector<8x1xf32>
    %cst_36 = arith.constant 3.200000e+01 : f32
    %86 = vector.broadcast %cst_36 : f32 to vector<8x1xf32>
    %87 = arith.divf %85, %86 : vector<8x1xf32>
    %88 = vector.broadcast %87 : vector<8x1xf32> to vector<8x32xf32>
    %89 = arith.subf %81, %88 : vector<8x32xf32>
    %90 = arith.mulf %89, %89 : vector<8x32xf32>
    %cst_37 = arith.constant dense<0.000000e+00> : vector<8xf32>
    %91 = vector.multi_reduction <add>, %90, %cst_37 [1] : vector<8x32xf32> to vector<8xf32>
    %92 = vector.shape_cast %91 : vector<8xf32> to vector<8x1xf32>
    %cst_38 = arith.constant 3.200000e+01 : f32
    %93 = vector.broadcast %cst_38 : f32 to vector<8x1xf32>
    %94 = arith.divf %92, %93 : vector<8x1xf32>
    %95 = vector.broadcast %87 : vector<8x1xf32> to vector<8x32xf32>
    %96 = arith.subf %81, %95 : vector<8x32xf32>
    %cst_39 = arith.constant 9.99999974E-6 : f32
    %97 = vector.broadcast %cst_39 : f32 to vector<8x1xf32>
    %98 = arith.addf %94, %97 : vector<8x1xf32>
    %99 = math.rsqrt %98 : vector<8x1xf32>
    %100 = vector.broadcast %99 : vector<8x1xf32> to vector<8x32xf32>
    %101 = arith.mulf %96, %100 : vector<8x32xf32>
    %102 = vector.broadcast %82 : vector<1x32xf32> to vector<8x32xf32>
    %103 = arith.mulf %101, %102 : vector<8x32xf32>
    %104 = vector.broadcast %83 : vector<1x32xf32> to vector<8x32xf32>
    %105 = arith.addf %103, %104 : vector<8x32xf32>
    %c0_40 = arith.constant 0 : index
    %c0_41 = arith.constant 0 : index
    %106 = vector.load %arg6[%c0_40, %c0_41] : memref<32x64xf32, #tpu.memory_space<vmem>>, vector<32x64xf32>
    %cst_42 = arith.constant dense<0.000000e+00> : vector<8x64xf32>
    %107 = tpu.matmul %105, %106, %cst_42 {dimension_numbers = #tpu.dot_dimension_numbers<[1], [0], [0], [1], [0, 0, 1, 1], [], []>} : vector<8x32xf32>, vector<32x64xf32>, vector<8x64xf32> -> vector<8x64xf32>
    %c0_43 = arith.constant 0 : index
    %c0_44 = arith.constant 0 : index
    %108 = vector.load %arg7[%c0_43, %c0_44] : memref<1x64xf32, #tpu.memory_space<vmem>>, vector<1x64xf32>
    %109 = vector.broadcast %108 : vector<1x64xf32> to vector<8x64xf32>
    %110 = arith.addf %107, %109 : vector<8x64xf32>
    %cst_45 = arith.constant 0.000000e+00 : f32
    %111 = vector.broadcast %cst_45 : f32 to vector<8x64xf32>
    %112 = arith.maximumf %110, %111 : vector<8x64xf32>
    %c0_46 = arith.constant 0 : index
    %c0_47 = arith.constant 0 : index
    %113 = vector.load %arg8[%c0_46, %c0_47] : memref<64x32xf32, #tpu.memory_space<vmem>>, vector<64x32xf32>
    %cst_48 = arith.constant dense<0.000000e+00> : vector<8x32xf32>
    %114 = tpu.matmul %112, %113, %cst_48 {dimension_numbers = #tpu.dot_dimension_numbers<[1], [0], [0], [1], [0, 0, 1, 1], [], []>} : vector<8x64xf32>, vector<64x32xf32>, vector<8x32xf32> -> vector<8x32xf32>
    %c0_49 = arith.constant 0 : index
    %c0_50 = arith.constant 0 : index
    %115 = vector.load %arg9[%c0_49, %c0_50] : memref<1x32xf32, #tpu.memory_space<vmem>>, vector<1x32xf32>
    %116 = vector.broadcast %115 : vector<1x32xf32> to vector<8x32xf32>
    %117 = arith.addf %114, %116 : vector<8x32xf32>
    %118 = arith.addf %105, %117 : vector<8x32xf32>
    %c0_51 = arith.constant 0 : index
    %c0_52 = arith.constant 0 : index
    %119 = vector.load %arg12[%c0_51, %c0_52] : memref<1x32xf32, #tpu.memory_space<vmem>>, vector<1x32xf32>
    %c0_53 = arith.constant 0 : index
    %c0_54 = arith.constant 0 : index
    %120 = vector.load %arg13[%c0_53, %c0_54] : memref<1x32xf32, #tpu.memory_space<vmem>>, vector<1x32xf32>
    %cst_55 = arith.constant dense<0.000000e+00> : vector<8xf32>
    %121 = vector.multi_reduction <add>, %118, %cst_55 [1] : vector<8x32xf32> to vector<8xf32>
    %122 = vector.shape_cast %121 : vector<8xf32> to vector<8x1xf32>
    %cst_56 = arith.constant 3.200000e+01 : f32
    %123 = vector.broadcast %cst_56 : f32 to vector<8x1xf32>
    %124 = arith.divf %122, %123 : vector<8x1xf32>
    %125 = vector.broadcast %124 : vector<8x1xf32> to vector<8x32xf32>
    %126 = arith.subf %118, %125 : vector<8x32xf32>
    %127 = arith.mulf %126, %126 : vector<8x32xf32>
    %cst_57 = arith.constant dense<0.000000e+00> : vector<8xf32>
    %128 = vector.multi_reduction <add>, %127, %cst_57 [1] : vector<8x32xf32> to vector<8xf32>
    %129 = vector.shape_cast %128 : vector<8xf32> to vector<8x1xf32>
    %cst_58 = arith.constant 3.200000e+01 : f32
    %130 = vector.broadcast %cst_58 : f32 to vector<8x1xf32>
    %131 = arith.divf %129, %130 : vector<8x1xf32>
    %132 = vector.broadcast %124 : vector<8x1xf32> to vector<8x32xf32>
    %133 = arith.subf %118, %132 : vector<8x32xf32>
    %cst_59 = arith.constant 9.99999974E-6 : f32
    %134 = vector.broadcast %cst_59 : f32 to vector<8x1xf32>
    %135 = arith.addf %131, %134 : vector<8x1xf32>
    %136 = math.rsqrt %135 : vector<8x1xf32>
    %137 = vector.broadcast %136 : vector<8x1xf32> to vector<8x32xf32>
    %138 = arith.mulf %133, %137 : vector<8x32xf32>
    %139 = vector.broadcast %119 : vector<1x32xf32> to vector<8x32xf32>
    %140 = arith.mulf %138, %139 : vector<8x32xf32>
    %141 = vector.broadcast %120 : vector<1x32xf32> to vector<8x32xf32>
    %142 = arith.addf %140, %141 : vector<8x32xf32>
    %c0_60 = arith.constant 0 : index
    %c0_61 = arith.constant 0 : index
    %c0_62 = arith.constant 0 : index
    %143 = vector.load %arg14[%c0_60, %c0_61, %c0_62] : memref<1x8x32xf32, #tpu.memory_space<vmem>>, vector<1x8x32xf32>
    %144 = vector.shape_cast %143 : vector<1x8x32xf32> to vector<8x32xf32>
    %145 = vector.shape_cast %142 : vector<8x32xf32> to vector<1x8x32xf32>
    tpu.vector_store %arg14[%c0_60, %c0_61, %c0_62], %145 {strides = array<i32>} : memref<1x8x32xf32, #tpu.memory_space<vmem>>, vector<1x8x32xf32>,
    return
  }
  func.func @transform_0(%arg0: i32) -> (i32, i32, i32) {
    %c0_i32 = arith.constant 0 : i32
    %c0_i32_0 = arith.constant 0 : i32
    %c0_i32_1 = arith.constant 0 : i32
    return %arg0, %c0_i32, %c0_i32_0 : i32, i32, i32
  }
  func.func @transform_1(%arg0: i32) -> (i32, i32) {
    %c0_i32 = arith.constant 0 : i32
    %c0_i32_0 = arith.constant 0 : i32
    %c0_i32_1 = arith.constant 0 : i32
    return %c0_i32, %c0_i32_0 : i32, i32
  }
  func.func @transform_2(%arg0: i32) -> (i32, i32) {
    %c0_i32 = arith.constant 0 : i32
    %c0_i32_0 = arith.constant 0 : i32
    %c0_i32_1 = arith.constant 0 : i32
    return %c0_i32, %c0_i32_0 : i32, i32
  }
  func.func @transform_3(%arg0: i32) -> (i32, i32) {
    %c0_i32 = arith.constant 0 : i32
    %c0_i32_0 = arith.constant 0 : i32
    %c0_i32_1 = arith.constant 0 : i32
    return %c0_i32, %c0_i32_0 : i32, i32
  }
  func.func @transform_4(%arg0: i32) -> (i32, i32) {
    %c0_i32 = arith.constant 0 : i32
    %c0_i32_0 = arith.constant 0 : i32
    %c0_i32_1 = arith.constant 0 : i32
    return %c0_i32, %c0_i32_0 : i32, i32
  }
  func.func @transform_5(%arg0: i32) -> (i32, i32) {
    %c0_i32 = arith.constant 0 : i32
    %c0_i32_0 = arith.constant 0 : i32
    %c0_i32_1 = arith.constant 0 : i32
    return %c0_i32, %c0_i32_0 : i32, i32
  }
  func.func @transform_6(%arg0: i32) -> (i32, i32) {
    %c0_i32 = arith.constant 0 : i32
    %c0_i32_0 = arith.constant 0 : i32
    %c0_i32_1 = arith.constant 0 : i32
    return %c0_i32, %c0_i32_0 : i32, i32
  }
  func.func @transform_7(%arg0: i32) -> (i32, i32) {
    %c0_i32 = arith.constant 0 : i32
    %c0_i32_0 = arith.constant 0 : i32
    %c0_i32_1 = arith.constant 0 : i32
    return %c0_i32, %c0_i32_0 : i32, i32
  }
  func.func @transform_8(%arg0: i32) -> (i32, i32) {
    %c0_i32 = arith.constant 0 : i32
    %c0_i32_0 = arith.constant 0 : i32
    %c0_i32_1 = arith.constant 0 : i32
    return %c0_i32, %c0_i32_0 : i32, i32
  }
  func.func @transform_9(%arg0: i32) -> (i32, i32) {
    %c0_i32 = arith.constant 0 : i32
    %c0_i32_0 = arith.constant 0 : i32
    %c0_i32_1 = arith.constant 0 : i32
    return %c0_i32, %c0_i32_0 : i32, i32
  }
  func.func @transform_10(%arg0: i32) -> (i32, i32) {
    %c0_i32 = arith.constant 0 : i32
    %c0_i32_0 = arith.constant 0 : i32
    %c0_i32_1 = arith.constant 0 : i32
    return %c0_i32, %c0_i32_0 : i32, i32
  }
  func.func @transform_11(%arg0: i32) -> (i32, i32) {
    %c0_i32 = arith.constant 0 : i32
    %c0_i32_0 = arith.constant 0 : i32
    %c0_i32_1 = arith.constant 0 : i32
    return %c0_i32, %c0_i32_0 : i32, i32
  }
  func.func @transform_12(%arg0: i32) -> (i32, i32) {
    %c0_i32 = arith.constant 0 : i32
    %c0_i32_0 = arith.constant 0 : i32
    %c0_i32_1 = arith.constant 0 : i32
    return %c0_i32, %c0_i32_0 : i32, i32
  }
  func.func @transform_13(%arg0: i32) -> (i32, i32, i32) {
    %c0_i32 = arith.constant 0 : i32
    %c0_i32_0 = arith.constant 0 : i32
    %c0_i32_1 = arith.constant 0 : i32
    return %arg0, %c0_i32, %c0_i32_0 : i32, i32, i32
  }
}

</mosaic_0001>

<bundles_post_ra>
// kernel: tpu_custom_call.1
= control target key start
LH: loop header
LB: loop body
LE: loop exit
PB: predicated region body
PF: predicated region fallthrough
CT: control target
= control target key end

     0   :  { %18 = vsyncpa [#allocation3], 0  ;;  %s2431_s0 = inlined_call_operand.hbm [shape: f32[16,8,32], index: 0, kind: input, shape index: {}]   ;;  %s2432_s1 = inlined_call_operand.vmem [shape: f32[32,96], index: 1, kind: input, shape index: {}]   ;;  %s2433_s2 = inlined_call_operand.vmem [shape: f32[1,96], index: 2, kind: input, shape index: {}]   ;;  %s2434_s3 = inlined_call_operand.vmem [shape: f32[32,32], index: 3, kind: input, shape index: {}]   ;;  %s2435_s4 = inlined_call_operand.vmem [shape: f32[1,32], index: 4, kind: input, shape index: {}]   ;;  %s2436_s5 = inlined_call_operand.vmem [shape: f32[32,64], index: 5, kind: input, shape index: {}]   ;;  %s2437_s6 = inlined_call_operand.vmem [shape: f32[1,64], index: 6, kind: input, shape index: {}]   ;;  %s2438_s7 = inlined_call_operand.vmem [shape: f32[64,32], index: 7, kind: input, shape index: {}]   ;;  %s2439_s8 = inlined_call_operand.vmem [shape: f32[1,32], index: 8, kind: input, shape index: {}]   ;;  %s2440_s9 = inlined_call_operand.vmem [shape: f32[1,32], index: 9, kind: input, shape index: {}]   ;;  %s2441_s10 = inlined_call_operand.vmem [shape: f32[1,32], index: 10, kind: input, shape index: {}]   ;;  %s2442_s11 = inlined_call_operand.vmem [shape: f32[1,32], index: 11, kind: input, shape index: {}]   ;;  %s2443_s12 = inlined_call_operand.vmem [shape: f32[1,32], index: 12, kind: input, shape index: {}]   ;;  %s2444_s13 = inlined_call_operand.hbm [shape: f32[16,8,32], index: 13, kind: output, shape index: {}]  }
   0x1   :  { %20 = vsyncpa [#allocation3 + $0x1], 0 }
   0x2   :  { %21 = vsyncpa [#allocation4], 0 }
   0x3   :  { %23 = vsyncpa [#allocation4 + $0x1], 0  ;;  %s2095_s25 = smov 0   ;;  %s2097_s26 = smov 0  }
   0x4   :  { %s2099_s27 = smov 0   ;;  %s2101_s28 = smov 0  }
   0x5 LB: > { %2450 = sst [smem:[#allocation8_spill]] %s1992_s25  ;;  %s2116_s29 = sadd.s32 4294967295, %s2004_s28   ;;  %s2004_s28 = sphi %s2101_s28, %s2464_s28   ;;  %s2000_s27 = sphi %s2099_s27, %s2466_s27   ;;  %s1996_s26 = sphi %s2097_s26, %s2468_s26   ;;  %s1992_s25 = sphi %s2095_s25, %s2467_s25  }
   0x6   : > { %2451 = sst [smem:[#allocation9_spill]] %s2000_s27  ;;  %s1627_s30 = sadd.s32 4294967294, %s2004_s28  }
   0x7   : > { %s2120_s14 = sadd.s32 1, %s2004_s28   ;;  %s36_s15 = sadd.s32 1, %s2000_s27 }
   0x8   : > { %2452 = sst [smem:[#allocation10_spill]] %s2120_s14  ;;  %s33_s16 = ssub.s32 %s2004_s28, %s2120_s14 }
   0x9   : > { %p43_p0 = scmp.ne.s32.totalorder %s2000_s27, %s1996_s26  ;;  %p34_p1 = scmp.eq.s32.totalorder %s33_s16, 0 }
   0xa   : > { %p44_p2 = scmp.eq.s32.totalorder %s2004_s28, 0  ;;  %p49_p3 = scmp.ne.s32.totalorder %s1996_s26, %s1992_s25 }
   0xb   : > { %p50_p4 = scmp.eq.s32.totalorder %s2116_s29, 0  ;;  %p325_p7 = scmp.eq.s32.totalorder %s2116_s29, 15 }
   0xc   : > { %s2132_s17 = scalar_select %p34_p1, %s2000_s27, %s36_s15  }
   0xd   : > { %p2134_p5 = por %p44_p2, %p43_p0  ;;  %p2138_p6 = por %p50_p4, %p49_p3 }
   0xe   : > { %2453 = sst [smem:[#allocation11_spill]] %s2132_s17  ;;  %p331_p8 = scmp.eq.s32.totalorder %s1627_s30, 15 }
   0xf   : > { %p1837_p9 = scmp.lt.s32.totalorder %s2004_s28, 16  ;;  %p2144_p10 = por %p325_p7, %p43_p0 }
  0x10   : > { %p2148_p11 = por %p331_p8, %p49_p3  ;;  %s387_s22 = sand.u32 1, %s2000_s27  }
  0x11   : > { %s2456_s20 = scalar_select %p2144_p10, 1, 0 }
  0x12   : > { %s2457_s21 = scalar_select %p2148_p11, 1, 0 }
  0x13   : > { %s1631_s23 = sshll.u32 %s2004_s28, 7  ;;  %s1630_s24 = sshll.u32 %s387_s22, 3 }
  0x14   : > { %s2157_s17 = scalar_lea.hbm %s2431_s0, %s1631_s23  ;;  %s391_s30 = scalar_lea.vmem [#allocation2], %s1630_s24 }
  0x15   : > { %s398_s14 = sshll.u32 %s391_s30, 4  ;;  %p2161_p12 = pnand %p1837_p9, %p2134_p5  ;;  %s2165_s14 = int_to_ptr.vmem [resolvable:$true] %s398_s14 }
  0x16   : > { %s388_s15 = scalar_lea.sflag [#allocation3], %s387_s22  ;;  %s1908_s23 = scalar_lea.hbm %s2157_s17, 128 }
  0x17   : > { %p1909_p1 = scmp.ne.s32.totalorder %s2157_s17, %s1908_s23  ;;  %p1910_p2 = pneg %p2161_p12 }
  0x18   : > { %s1913_s16 = scalar_lea.hbm %s2431_s0, 2048  ;;  %p1914_p5 = scmp.lt.u32.totalorder %s2157_s17, %s2431_s0 }
  0x19   : > { %p1911_p3 = pnand %p1910_p2, %p1909_p1  ;;  %p1915_p7 = scmp.lt.u32.totalorder %s1913_s16, %s1908_s23 }
  0x1a   : > { %p1917_p9 = scmp.lt.u32.totalorder %s1908_s23, %s2157_s17 }
  0x1b   : > { %p1912_p4 = pneg %p1911_p3  ;;  %p1916_p8 = por %p1915_p7, %p1914_p5 }
  0x1d   : > { %p1918_p13 = por %p1917_p9, %p1916_p8 }
  0x1f   : > { %p1919_p0 = pnand %p1918_p13, %p1912_p4 }
  0x21   : > { %1922 = shalt.err (!%p1919_p0)
}
  0x22   : > { %s1923_s22 = scalar_lea.vmem %s2165_s14, 128  ;;  %s2006_s18 = smov [#allocation2]  }
  0x23   : > { %p1924_p1 = scmp.ne.s32.totalorder %s2165_s14, %s1923_s22  ;;  %s1928_s24 = sshll.u32 %s2006_s18, 4  ;;  %s1929_s24 = int_to_ptr.vmem [resolvable:$false] %s1928_s24 }
  0x24   : > { %s1930_s27 = scalar_lea.vmem %s1929_s24, 256  ;;  %p1931_p10 = scmp.lt.s32.totalorder %s2165_s14, %s1929_s24 }
  0x25   : > { %p1926_p3 = pnand %p1924_p1, %p1910_p2  ;;  %p1932_p5 = scmp.lt.s32.totalorder %s1930_s27, %s1923_s22 }
  0x27   : > { %p1927_p11 = pneg %p1926_p3  ;;  %p1933_p7 = por %p1932_p5, %p1931_p10 }
  0x29   : > { %p1934_p8 = pnand %p1933_p7, %p1927_p11 }
  0x2b   : > { %1937 = shalt.err (!%p1934_p8)
}
  0x2c   : > { %1832 = dma.hbm_to_vmem [thread:$0]  (!%p2161_p12), %s2157_s17, 128, %s2165_s14, %s388_s15  }
  0x2d   : > { %p2459_p13 = scmp.lt.s32.totalorder %s2004_s28, 17  ;;  %p2460_p0 = scmp.ge.s32.totalorder %s2004_s28, 1 }
  0x2f   : > { %p404_p2 = pnand %p2460_p0, %p2459_p13 }
  0x30   : > { %s2199_s23 = sand.u32 (!%p404_p2), 1, %s1996_s26  }
  0x31   : > { %407 = sbr.rel (%p404_p2) target bundleno = 2600 (0xa28), region = 72  ;;  %s1633_s16 = sshll.u32 (!%p404_p2), %s2199_s23, 3 }
  0x32   : > { %s410_s30 = scalar_lea.sflag (!%p404_p2), [#allocation3], %s2199_s23  ;;  %s413_s25 = scalar_lea.vmem (!%p404_p2), [#allocation2], %s1633_s16 }
  0x38   : > { %1983 = dma.done.wait (%p2138_p6), %s410_s30, 128  }
  0x39   : > { %1985 = vsyncadd (%p2138_p6), %s410_s30, 4294967168  ;;  %v2007_v0 = vmov 0.0|0.0   ;;  %vm2008_vm0 = vmmov 0   ;;  %v2009_v1 = vmov 0.0   ;;  %v457_v2 = vld [vmem:[%s2432_s1] sm:$0xff]  ;;  %v458_v3 = vld [vmem:[%s2432_s1 + $0x8] sm:$0xff] }
  0x3a   : > { %1795 = vmatprep.subr.bf16.mxu1 %v2007_v0  ;;  %1711 = vmatprep.mubr.msk.f32.mxu1 %vm2008_vm0, %v2009_v1  ;;  %v459_v4 = vld [vmem:[%s2432_s1 + $0x10] sm:$0xff]  ;;  %v1796_v5 = vpack.c.bf16 %v458_v3, %v457_v2  ;;  %v460_v6 = vld [vmem:[%s2432_s1 + $0x18] sm:$0xff]  ;;  %v2228_v8 = vld [vmem:[%s413_s25] sm:$0xff]  ;;  %vm468_vm1 = vcmask 261120   ;;  %s2010_s17 = smov 120   ;;  %s2011_s25 = smov 96  }
  0x3b   : > { %1724 = vmatprep.subr.mxu0 %v2009_v1  ;;  %1726 = vmatprep.mubr.msk.f32.mxu0 %vm2008_vm0, %v2009_v1  ;;  %v1799_v7 = vpack.c.bf16 %v460_v6, %v459_v4  ;;  %v1635_v9 = vld [vmem:[%s2433_s2] ss:$0 sm:$0xff]  ;;  %s2012_s15 = smov 80   ;;  %s2013_s19 = smov 88   ;;  %vm545_vm2 = vcmask 64512   ;;  %vm1219_vm3 = vcmask 130048  }
  0x3c   : > { %1797 = vmatpush3.bf16.msra.mxu1 %v1796_v5  ;;  %s2014_s22 = smov 72   ;;  %s2015_s18 = smov 112   ;;  %vm1221_vm4 = vcmask 195584   ;;  %vm1438_vm5 = vcmask 523264  }
  0x3d   : > { %1798 = vmatprep.subr.bf16.mxu1 %v2007_v0  ;;  %s2016_s24 = smov 104   ;;  %s2017_s27 = smov 56  }
  0x3e   : > { %s2018_s30 = smov 64   ;;  %s2019_s14 = smov 48  }
  0x3f   : > { %p2461_p10 = scmp.ne.s32.totalorder %s2456_s20, 0 }
  0x40   : > { %1800 = vmatpush3.bf16.msra.mxu1 %v1799_v7 }
  0x41   : > { %1714 = vmatprep.subr.mxu1 %v2009_v1 }
  0x43   : > { %1712 = vmatmul.mubr.msk.f32.vlgmr.msra.gmra.mrb[0].mxu1 %vm468_vm1, %v2228_v8 }
  0x44   : > { %1716 = vmatprep.mubr.msk.f32.mxu1 %vm2008_vm0, %v2009_v1 }
 0x116   : > { %v538_v10 = vpop.f32.mrb[0].mxu1 }
 0x117   : > { %v2238_v11 = vadd.f32 %v1635_v9, %v538_v10  ;;  %v1713_v12 = vpop.f32.mrb[1].mxu1 }
 0x118   : > { %v1224_v12 = vld [vmem:[%s2434_s3 + $0x8] sm:$0xff] }
 0x119   : > { %708 = vrot.lane.b32.xlu1 %v2238_v11, %s2010_s17  ;;  %543 = vrot.lane.b32.xlu0 %v2238_v11, %s2011_s25  ;;  %s2020_s17 = smov 40   ;;  %s2023_s25 = smov 24  }
 0x11d   : > { %876 = vrot.lane.b32.xlu1 %v2238_v11, %s2012_s15  ;;  %710 = vrot.lane.b32.xlu0 %v2238_v11, %s2013_s19 }
 0x121   : > { %1042 = vrot.lane.b32.xlu1 %v2238_v11, %s2014_s22  ;;  %874 = vrot.lane.b32.xlu0 %v2238_v11, %s2015_s18  ;;  %s2021_s18 = smov 8  }
 0x125   : > { %1040 = vrot.lane.b32.xlu0 %v2238_v11, %s2016_s24  ;;  %s1544_s24 = scalar_lea.sflag [#allocation4], %s2199_s23 }
 0x18b   : > { %v709_v13 = vpop.permute.xlu1 %708  ;;  %v544_v14 = vpop.permute.xlu0 %543 }
 0x18c   : > { %1715 = vmatpush3.xpose.msk.msra.mxu1 %vm545_vm2, %v544_v14 }
 0x18d   : > { %1719 = vmatprep.subr.mxu1 %v2009_v1 }
 0x18f   : > { %1717 = vmatmul.mubr.msk.f32.vlgmr.msra.gmra.mrb[2].mxu1 %vm545_vm2, %v2238_v11  ;;  %v711_v15 = vpop.permute.xlu0 %710  ;;  %v877_v16 = vpop.permute.xlu1 %876 }
 0x190   : > { %1725 = vmatpush3.xpose.msk.msra.mxu0 %vm545_vm2, %v711_v15  ;;  %1721 = vmatprep.mubr.msk.f32.mxu1 %vm2008_vm0, %v2009_v1 }
 0x191   : > { %1734 = vmatprep.subr.mxu0 %v2009_v1 }
 0x193   : > { %1727 = vmatmul.mubr.msk.f32.vlgmr.msra.gmra.mrb[0].mxu0 %vm545_vm2, %v709_v13  ;;  %v875_v17 = vpop.permute.xlu0 %874  ;;  %v1043_v18 = vpop.permute.xlu1 %1042 }
 0x194   : > { %1735 = vmatpush3.xpose.msk.msra.mxu0 %vm545_vm2, %v877_v16  ;;  %1736 = vmatprep.mubr.msk.f32.mxu0 %vm2008_vm0, %v2009_v1 }
 0x195   : > { %1744 = vmatprep.subr.mxu0 %v2009_v1 }
 0x197   : > { %1737 = vmatmul.mubr.msk.f32.vlgmr.msra.gmra.mrb[2].mxu0 %vm545_vm2, %v875_v17  ;;  %v1041_v19 = vpop.permute.xlu0 %1040 }
 0x198   : > { %1745 = vmatpush3.xpose.msk.msra.mxu0 %vm545_vm2, %v1043_v18  ;;  %1746 = vmatprep.mubr.msk.f32.mxu0 %vm2008_vm0, %v2009_v1  ;;  %v1225_v18 = vld [vmem:[%s2434_s3 + $0x10] sm:$0xff] }
 0x199   : > { %1801 = vmatprep.subr.bf16.mxu0 %v2007_v0 }
 0x19b   : > { %1747 = vmatmul.mubr.msk.f32.vlgmr.msra.gmra.mrb[4].mxu0 %vm545_vm2, %v1041_v19  ;;  %v1226_v19 = vld [vmem:[%s2434_s3 + $0x18] sm:$0xff] }
 0x19c   : > { %1762 = vmatprep.mubr.msk.f32.mxu0 %vm2008_vm0, %v2009_v1 }
 0x262   : > { %v616_v20 = vpop.f32.mrb[2].mxu1 }
 0x263   : > { %v620_v21 = vmul.f32 0.35355338, %v616_v20  ;;  %v1718_v22 = vpop.f32.mrb[3].mxu1  ;;  %v1805_v20 = vpack.c.bf16 %v1226_v19, %v1225_v18 }
 0x265   : > { %v621_v23 = vsel %vm545_vm2, %v620_v21, -inf }
 0x266   : > { %v782_v24 = vpop.f32.mrb[0].mxu0  ;;  %622 = vmax.xlane.f32.xlu1 %v621_v23 }
 0x267   : > { %v786_v25 = vmul.f32 0.35355338, %v782_v24  ;;  %v1728_v26 = vpop.f32.mrb[1].mxu0 }
 0x269   : > { %v787_v27 = vsel %vm545_vm2, %v786_v25, -inf }
 0x26a   : > { %788 = vmax.xlane.f32.xlu0 %v787_v27  ;;  %v948_v28 = vpop.f32.mrb[2].mxu0 }
 0x26b   : > { %v952_v29 = vmul.f32 0.35355338, %v948_v28  ;;  %v1738_v30 = vpop.f32.mrb[3].mxu0 }
 0x26d   : > { %v953_v31 = vsel %vm545_vm2, %v952_v29, -inf }
 0x26e   : > { %954 = vmax.xlane.f32.xlu0 %v953_v31  ;;  %v1114_v32 = vpop.f32.mrb[4].mxu0  ;;  %v1649_v31 = vld [vmem:[%s2435_s4] ss:$0 sm:$0xff] }
 0x26f   : > { %v1118_v33 = vmul.f32 0.35355338, %v1114_v32  ;;  %v1748_v34 = vpop.f32.mrb[5].mxu0 }
 0x271   : > { %v1119_v35 = vsel %vm545_vm2, %v1118_v33, -inf }
 0x272   : > { %1120 = vmax.xlane.f32.xlu1 %v1119_v35 }
 0x283   : > { %798 = vrot.lane.b32.xlu1 %v2238_v11, %s2017_s27 }
 0x2f3   : > { %v623_v36 = vpop.xlane.xlu1 %622 }
 0x2f4   : > { %v624_v37 = vsub.f32 %v620_v21, %v623_v36 }
 0x2f6   : > { %v625_v38 = vmul.f32 1.442695, %v624_v37 }
 0x2f7   : > { %v789_v39 = vpop.xlane.xlu0 %788 }
 0x2f8   : > { %1888 = vpow2.f32 %v625_v38  ;;  %v790_v40 = vsub.f32 %v786_v25, %v789_v39 }
 0x2fa   : > { %v791_v41 = vmul.f32 1.442695, %v790_v40 }
 0x2fb   : > { %v955_v51 = vpop.xlane.xlu0 %954 }
 0x2fc   : > { %1890 = vpow2.f32 %v791_v41  ;;  %v956_v52 = vsub.f32 %v952_v29, %v955_v51 }
 0x2fe   : > { %v957_v53 = vmul.f32 1.442695, %v956_v52  ;;  %v1427_v52 = vld [vmem:[%s2438_s7 + $0x20] sm:$0xff] }
 0x2ff   : > { %v1121_v42 = vpop.xlane.xlu1 %1120 }
 0x300   : > { %v1122_v43 = vsub.f32 %v1118_v33, %v1121_v42  ;;  %v1339_v42 = vld [vmem:[%s2436_s5 + $0x8] sm:$0xff] }
 0x302   : > { %v1889_v44 = vpop.eup %1888  ;;  %v1123_v45 = vmul.f32 1.442695, %v1122_v43 }
 0x303   : > { %v627_v46 = vsel %vm545_vm2, %v1889_v44, 0.0  ;;  %v799_v56 = vpop.permute.xlu1 %798 }
 0x304   : > { %1892 = vpow2.f32 %v1123_v45  ;;  %628 = vadd.xlane.f32.xlu0 %v627_v46  ;;  %v1423_v46 = vld [vmem:[%s2438_s7] sm:$0xff] }
 0x305   : > { %1894 = vpow2.f32 %v957_v53  ;;  %v1428_v53 = vld [vmem:[%s2438_s7 + $0x28] sm:$0xff] }
 0x306   : > { %v1891_v47 = vpop.eup %1890 }
 0x307   : > { %v793_v48 = vsel %vm545_vm2, %v1891_v47, 0.0 }
 0x308   : > { %794 = vadd.xlane.f32.xlu1 %v793_v48  ;;  %v1425_v48 = vld [vmem:[%s2438_s7 + $0x10] sm:$0xff] }
 0x30e   : > { %v1893_v49 = vpop.eup %1892 }
 0x30f   : > { %v1125_v50 = vsel %vm545_vm2, %v1893_v49, 0.0  ;;  %v1895_v54 = vpop.eup %1894 }
 0x310   : > { %1126 = vadd.xlane.f32.xlu1 %v1125_v50  ;;  %v959_v55 = vsel %vm545_vm2, %v1895_v54, 0.0  ;;  %v1426_v50 = vld [vmem:[%s2438_s7 + $0x18] sm:$0xff] }
 0x311   : > { %v1817_v51 = vpack.c.bf16 %v1426_v50, %v1425_v48 }
 0x31a   : > { %632 = vrot.lane.b32.xlu0 %v2238_v11, %s2018_s30 }
 0x321   : > { %964 = vrot.lane.b32.xlu1 %v2238_v11, %s2019_s14 }
 0x339   : > { %960 = vadd.xlane.f32.xlu0 %v959_v55 }
 0x34f   : > { %1130 = vrot.lane.b32.xlu0 %v2238_v11, %s2020_s17  ;;  %v1223_v11 = vld [vmem:[%s2434_s3] sm:$0xff]  ;;  %s2022_s17 = smov 16  }
 0x350   : > { %v1802_v13 = vpack.c.bf16 %v1224_v12, %v1223_v11 }
 0x352   : > { %1803 = vmatpush3.bf16.msra.mxu0 %v1802_v13 }
 0x353   : > { %1804 = vmatprep.subr.bf16.mxu0 %v2007_v0 }
 0x356   : > { %1806 = vmatpush3.bf16.msra.mxu0 %v1805_v20 }
 0x357   : > { %1813 = vmatprep.subr.bf16.mxu0 %v2007_v0 }
 0x391   : > { %v629_v57 = vpop.xlane.xlu0 %628 }
 0x392   : > { %1896 = vrcp.f32 %v629_v57 }
 0x395   : > { %v633_v58 = vpop.permute.xlu0 %632  ;;  %v795_v59 = vpop.xlane.xlu1 %794 }
 0x396   : > { %1898 = vrcp.f32 %v795_v59  ;;  %1720 = vmatpush3.msra.mxu1 %v633_v58  ;;  %v1651_v59 = vld [vmem:[%s2440_s9] ss:$0 sm:$0xff] }
 0x397   : > { %1729 = vmatprep.subr.mxu1 %v2009_v1 }
 0x39c   : > { %v1897_v60 = vpop.eup %1896 }
 0x39d   : > { %v631_v61 = vmul.f32 %v1897_v60, %v1889_v44  ;;  %v1127_v62 = vpop.xlane.xlu1 %1126  ;;  %v1341_v44 = vld [vmem:[%s2436_s5 + $0x18] sm:$0xff] }
 0x39f   : > { %1722 = vmatmul.mubr.msk.f32.vlgmr.msra.gmra.mrb[4].mxu1 %vm545_vm2, %v631_v61  ;;  %v1652_v61 = vld [vmem:[%s2441_s10] ss:$0 sm:$0xff] }
 0x3a0   : > { %v1899_v63 = vpop.eup %1898  ;;  %1730 = vmatpush3.msra.mxu1 %v799_v56  ;;  %1731 = vmatprep.mubr.msk.f32.mxu1 %vm2008_vm0, %v2009_v1 }
 0x3a1   : > { %v797_v2 = vmul.f32 %v1899_v63, %v1891_v47  ;;  %v965_v3 = vpop.permute.xlu1 %964  ;;  %1739 = vmatprep.subr.mxu1 %v2009_v1  ;;  %v1424_v47 = vld [vmem:[%s2438_s7 + $0x8] sm:$0xff] }
 0x3a3   : > { %1732 = vmatmul.mubr.msk.f32.vlgmr.msra.gmra.mrb[6].mxu1 %vm545_vm2, %v797_v2  ;;  %v1430_v2 = vld [vmem:[%s2438_s7 + $0x38] sm:$0xff] }
 0x3a4   : > { %1740 = vmatpush3.msra.mxu1 %v965_v3  ;;  %1741 = vmatprep.mubr.msk.f32.mxu1 %vm2008_vm0, %v2009_v1 }
 0x3a5   : > { %1749 = vmatprep.subr.mxu1 %v2009_v1 }
 0x3c6   : > { %v961_v4 = vpop.xlane.xlu0 %960 }
 0x3c7   : > { %1900 = vrcp.f32 %v961_v4  ;;  %v1653_v4 = vld [vmem:[%s2437_s6] ss:$0 sm:$0xff] }
 0x3c8   : > { %1902 = vrcp.f32 %v1127_v62 }
 0x3ca   : > { %v1131_v9 = vpop.permute.xlu0 %1130 }
 0x3d1   : > { %v1901_v5 = vpop.eup %1900 }
 0x3d2   : > { %v963_v6 = vmul.f32 %v1901_v5, %v1895_v54  ;;  %v1903_v7 = vpop.eup %1902  ;;  %v1820_v54 = vpack.c.bf16 %v1428_v53, %v1427_v52 }
 0x3d3   : > { %v1129_v10 = vmul.f32 %v1903_v7, %v1893_v49  ;;  %v1814_v49 = vpack.c.bf16 %v1424_v47, %v1423_v46 }
 0x3d4   : > { %1742 = vmatmul.mubr.msk.f32.vlgmr.msra.gmra.mrb[8].mxu1 %vm545_vm2, %v963_v6 }
 0x3d5   : > { %1750 = vmatpush3.msra.mxu1 %v1131_v9  ;;  %1751 = vmatprep.mubr.msk.f32.mxu1 %vm2008_vm0, %v2009_v1 }
 0x3d6   : > { %1807 = vmatprep.subr.bf16.mxu1 %v2007_v0 }
 0x3d8   : > { %1752 = vmatmul.mubr.msk.f32.vlgmr.msra.gmra.mrb[10].mxu1 %vm545_vm2, %v1129_v10  ;;  %v1655_v10 = vld [vmem:[%s2439_s8] ss:$0 sm:$0xff] }
 0x3d9   : > { %1773 = vmatprep.mubr.msk.f32.mxu1 %vm2008_vm0, %v2009_v1 }
 0x472   : > { %v704_v14 = vpop.f32.mrb[4].mxu1 }
 0x473   : > { %v1723_v15 = vpop.f32.mrb[5].mxu1 }
 0x476   : > { %v870_v16 = vpop.f32.mrb[6].mxu1 }
 0x477   : > { %1207 = vrot.lane.b32.xlu1 %v870_v16, %s2021_s18  ;;  %v1733_v17 = vpop.f32.mrb[7].mxu1 }
 0x4a7   : > { %v1036_v21 = vpop.f32.mrb[8].mxu1 }
 0x4a8   : > { %1211 = vrot.lane.b32.xlu0 %v1036_v21, %s2022_s17  ;;  %v1743_v22 = vpop.f32.mrb[9].mxu1  ;;  %s1660_s17 = sshll.u32 %s2116_s29, 7  ;;  %s2024_s29 = smov [#allocation5]  }
 0x4a9   : > { %s2387_s18 = scalar_lea.hbm %s2444_s13, %s1660_s17 }
 0x4ab   : > { %v1202_v23 = vpop.f32.mrb[10].mxu1 }
 0x4ac   : > { %1215 = vrot.lane.b32.xlu1 %v1202_v23, %s2023_s25  ;;  %v1753_v24 = vpop.f32.mrb[11].mxu1  ;;  %s455_s25 = scalar_lea.vmem [#allocation5], %s1633_s16  ;;  %s1942_s16 = sshll.u32 %s2024_s29, 4  ;;  %s1943_s16 = int_to_ptr.vmem [resolvable:$false] %s1942_s16 }
 0x4ad   : > { %s1557_s15 = sshll.u32 %s455_s25, 4  ;;  %s1944_s30 = scalar_lea.vmem %s1943_s16, 256  ;;  %s2389_s15 = int_to_ptr.vmem [resolvable:$true] %s1557_s15 }
 0x4ae   : > { %s1938_s27 = scalar_lea.vmem %s2389_s15, 128  ;;  %p1945_p4 = scmp.lt.s32.totalorder %s2389_s15, %s1943_s16 }
 0x4af   : > { %p1939_p6 = scmp.ne.s32.totalorder %s2389_s15, %s1938_s27  ;;  %p1946_p9 = scmp.lt.s32.totalorder %s1944_s30, %s1938_s27 }
 0x4b1   : > { %p1940_p11 = pnand %p1939_p6, %p2461_p10  ;;  %p1947_p1 = por %p1946_p9, %p1945_p4 }
 0x4b3   : > { %p1941_p12 = pneg %p1940_p11 }
 0x4b5   : > { %p1948_p3 = pnand %p1947_p1, %p1941_p12 }
 0x4e9   : > { %v1208_v25 = vpop.permute.xlu1 %1207 }
 0x4ea   : > { %v1218_v27 = vsel %vm545_vm2, %v704_v14, %v1208_v25  ;;  %v1657_v25 = vld [vmem:[%s2442_s11] ss:$0 sm:$0xff] }
 0x51a   : > { %v1212_v26 = vpop.permute.xlu0 %1211 }
 0x51b   : > { %v1220_v28 = vsel %vm1219_vm3, %v1218_v27, %v1212_v26  ;;  %v1658_v27 = vld [vmem:[%s2443_s12] ss:$0 sm:$0xff] }
 0x51e   : > { %v1216_v29 = vpop.permute.xlu1 %1215 }
 0x51f   : > { %v1222_v30 = vsel %vm1221_vm4, %v1220_v28, %v1216_v29 }
 0x520   : > { %1763 = vmatmul.mubr.msk.f32.vlgmr.msra.gmra.mrb[6].mxu0 %vm468_vm1, %v1222_v30 }
 0x521   : > { %1792 = vmatprep.mubr.msk.f32.mxu0 %vm2008_vm0, %v2009_v1  ;;  %v1338_v1 = vld [vmem:[%s2436_s5] sm:$0xff]  ;;  %1815 = vmatpush3.bf16.msra.mxu0 %v1814_v49 }
 0x522   : > { %v1808_v43 = vpack.c.bf16 %v1339_v42, %v1338_v1  ;;  %1816 = vmatprep.subr.bf16.mxu0 %v2007_v0 }
 0x524   : > { %1809 = vmatpush3.bf16.msra.mxu1 %v1808_v43 }
 0x525   : > { %1810 = vmatprep.subr.bf16.mxu1 %v2007_v0  ;;  %1818 = vmatpush3.bf16.msra.mxu0 %v1817_v51 }
 0x526   : > { %1819 = vmatprep.subr.bf16.mxu0 %v2007_v0 }
 0x529   : > { %1821 = vmatpush3.bf16.msra.mxu0 %v1820_v54 }
 0x52a   : > { %1822 = vmatprep.subr.bf16.mxu0 %v2007_v0  ;;  %v1429_v0 = vld [vmem:[%s2438_s7 + $0x30] sm:$0xff] }
 0x52b   : > { %v1823_v3 = vpack.c.bf16 %v1430_v2, %v1429_v0 }
 0x52d   : > { %1824 = vmatpush3.bf16.msra.mxu0 %v1823_v3 }
 0x5f3   : > { %v1303_v32 = vpop.f32.mrb[6].mxu0 }
 0x5f4   : > { %v1304_v33 = vadd.f32 %v1649_v31, %v1303_v32  ;;  %v1764_v34 = vpop.f32.mrb[7].mxu0 }
 0x5f6   : > { %v1307_v35 = vadd.f32 %v1304_v33, %v2228_v8  ;;  %v1340_v8 = vld [vmem:[%s2436_s5 + $0x10] sm:$0xff] }
 0x5f7   : > { %v1811_v45 = vpack.c.bf16 %v1341_v44, %v1340_v8 }
 0x5f8   : > { %v1310_v36 = vsel %vm468_vm1, %v1307_v35, 0.0 }
 0x5f9   : > { %1311 = vadd.xlane.f32.xlu0 %v1310_v36  ;;  %1812 = vmatpush3.bf16.msra.mxu1 %v1811_v45 }
 0x686   : > { %v1312_v37 = vpop.xlane.xlu0 %1311 }
 0x687   : > { %v1314_v38 = vmul.f32 0.03125, %v1312_v37 }
 0x689   : > { %v1315_v39 = vsub.f32 %v1307_v35, %v1314_v38 }
 0x68b   : > { %v1316_v40 = vmul.f32 %v1315_v39, %v1315_v39 }
 0x68d   : > { %v1317_v41 = vsel %vm468_vm1, %v1316_v40, 0.0 }
 0x68e   : > { %1318 = vadd.xlane.f32.xlu1 %v1317_v41 }
 0x71b   : > { %v1319_v55 = vpop.xlane.xlu1 %1318 }
 0x71c   : > { %v1320_v56 = vmul.f32 0.03125, %v1319_v55 }
 0x71e   : > { %v1321_v57 = vadd.f32 1e-05, %v1320_v56 }
 0x720   : > { %1904 = vrsqrt.f32 %v1321_v57 }
 0x72a   : > { %v1905_v58 = vpop.eup %1904 }
 0x72b   : > { %v1323_v60 = vmul.f32 %v1905_v58, %v1315_v39 }
 0x72d   : > { %v1330_v62 = vmul.f32 %v1651_v59, %v1323_v60 }
 0x72f   : > { %v1337_v63 = vadd.f32 %v1652_v61, %v1330_v62 }
 0x731   : > { %1774 = vmatmul.mubr.msk.f32.vlgmr.msra.gmra.mrb[12].mxu1 %vm468_vm1, %v1337_v63 }
 0x804   : > { %v1418_v5 = vpop.f32.mrb[12].mxu1 }
 0x805   : > { %v1419_v6 = vadd.f32 %v1653_v4, %v1418_v5  ;;  %v1775_v7 = vpop.f32.mrb[13].mxu1 }
 0x807   : > { %v1422_v9 = vmax.f32 %v1419_v6, 0.0 }
 0x809   : > { %1793 = vmatmul.mubr.msk.f32.vlgmr.msra.gmra.mrb[8].mxu0 %vm1438_vm5, %v1422_v9 }
 0x8dc   : > { %v1508_v11 = vpop.f32.mrb[8].mxu0 }
 0x8dd   : > { %v1509_v12 = vadd.f32 %v1655_v10, %v1508_v11  ;;  %v1794_v13 = vpop.f32.mrb[9].mxu0 }
 0x8df   : > { %v1512_v14 = vadd.f32 %v1509_v12, %v1337_v63 }
 0x8e1   : > { %v1515_v15 = vsel %vm468_vm1, %v1512_v14, 0.0 }
 0x8e2   : > { %1516 = vadd.xlane.f32.xlu0 %v1515_v15 }
 0x96f   : > { %v1517_v16 = vpop.xlane.xlu0 %1516 }
 0x970   : > { %v1518_v17 = vmul.f32 0.03125, %v1517_v16 }
 0x972   : > { %v1519_v18 = vsub.f32 %v1512_v14, %v1518_v17 }
 0x974   : > { %v1520_v19 = vmul.f32 %v1519_v18, %v1519_v18 }
 0x976   : > { %v1521_v20 = vsel %vm468_vm1, %v1520_v19, 0.0 }
 0x977   : > { %1522 = vadd.xlane.f32.xlu0 %v1521_v20 }
 0xa04   : > { %v1523_v21 = vpop.xlane.xlu0 %1522 }
 0xa05   : > { %v1524_v22 = vmul.f32 0.03125, %v1523_v21 }
 0xa07   : > { %v1525_v23 = vadd.f32 1e-05, %v1524_v22 }
 0xa09   : > { %1906 = vrsqrt.f32 %v1525_v23 }
 0xa13   : > { %v1907_v24 = vpop.eup %1906 }
 0xa14   : > { %v1527_v26 = vmul.f32 %v1907_v24, %v1519_v18 }
 0xa16   : > { %v1534_v28 = vmul.f32 %v1657_v25, %v1527_v26 }
 0xa18   : > { %v1541_v29 = vadd.f32 %v1658_v27, %v1534_v28 }
 0xa1a   : > { %1542 = vst.msk [vmem:[%s455_s25] sm:$0xff] %vm468_vm1, %v1541_v29 }
 0xa1b   : > { %1951 = shalt.err (!%p1948_p3)
}
 0xa1c   : > { %s1952_s23 = scalar_lea.hbm %s2387_s18, 128  ;;  %s1956_s25 = scalar_lea.hbm %s2444_s13, 2048 }
 0xa1d   : > { %p1953_p5 = scmp.ne.s32.totalorder %s2387_s18, %s1952_s23  ;;  %p1957_p13 = scmp.lt.u32.totalorder %s2387_s18, %s2444_s13 }
 0xa1e   : > { %p1958_p0 = scmp.lt.u32.totalorder %s1956_s25, %s1952_s23  ;;  %p1960_p6 = scmp.lt.u32.totalorder %s1952_s23, %s2387_s18 }
 0xa1f   : > { %p1954_p7 = pnand %p1953_p5, %p2461_p10 }
 0xa20   : > { %p1959_p2 = por %p1958_p0, %p1957_p13 }
 0xa21   : > { %p1955_p8 = pneg %p1954_p7 }
 0xa22   : > { %p1961_p11 = por %p1960_p6, %p1959_p2 }
 0xa24   : > { %p1962_p12 = pnand %p1961_p11, %p1955_p8 }
 0xa26   : > { %1965 = shalt.err (!%p1962_p12)
}
 0xa27   : > { %1827 = dma.vmem_to_hbm [thread:$0]  (%p2461_p10), %s2389_s15, 128, %s2387_s18, %s1544_s24  }
 0xa28 PF: > { %s2462_s27 = sld [smem:[#allocation8_spill]]  ;;  %p1838_p4 = scmp.ge.s32.totalorder %s2004_s28, 2 }
 0xa29   : > { %p2463_p9 = scmp.ne.s32.totalorder %s2457_s21, 0 }
 0xa2b   : > { %p1834_p1 = pnand %p1838_p4, %p2463_p9 }
 0xa2e   : > { %s1569_s29 = sand.u32 1, %s2462_s27  }
 0xa2f   : > { %s1570_s16 = scalar_lea.sflag [#allocation4], %s1569_s29 }
 0xa30   : > { %1987 = dma.done.wait (!%p1834_p1), %s1570_s16, 128  }
 0xa31   : > { %1989 = vsyncadd (!%p1834_p1), %s1570_s16, 4294967168  ;;  %s2464_s28 = sld [smem:[#allocation10_spill]]  ;;  %s2465_s30 = sld [smem:[#allocation9_spill]] }
 0xa32   : > { %s2466_s27 = sld [smem:[#allocation11_spill]]  ;;  %s2467_s25 = smov %s1996_s26 }
 0xa37   : > { %p26_p3 = scmp.ge.s32.totalorder %s2464_s28, 18   ;;  %s2468_s26 = smov %s2465_s30 }
 0xa39   :  { %28 = sbr.rel (!%p26_p3) target bundleno = 5 (0x5), region = 117 }
 0xa40   :  { %1575 = vsyncpa [#allocation3], 1 }
 0xa41   :  { %1577 = vsyncpa [#allocation3 + $0x1], 1 }
 0xa42   :  { %1578 = vsyncpa [#allocation4], 1 }
 0xa43   :  { %1580 = vsyncpa [#allocation4 + $0x1], 1 }

</bundles_post_ra>
